<compile_context>
chip_gen: v6e
topology: v6e:2x2x1
jax: 0.10.0
libtpu: 0.0.40
codegen_flags: <defaults>
</compile_context>

<pallas_src>
import functools
from math import sqrt

import jax
import jax.numpy as jnp
from jax.experimental import pallas as pl
from jax.experimental.pallas import tpu as pltpu


def _round_up(x, m):
    return ((x + m - 1) // m) * m


def _sublane_multiple(dtype):
    itemsize = jnp.dtype(dtype).itemsize
    return {4: 8, 2: 16, 1: 32}.get(itemsize, 8)


def _choose_tn(n_p, block_n):
    """Largest multiple-of-128 divisor of n_p that is <= block_n."""
    q = n_p // 128
    d_max = max(1, min(q, block_n // 128))
    for d in range(d_max, 0, -1):
        if q % d == 0:
            return 128 * d
    return 128


def _largest_proper_divisor(q):
    for d in range(q // 2, 0, -1):
        if q % d == 0:
            return d
    return 1


def _footprint_bytes(tm, tn, tk, itemsize, multi_k):
    """Approximate VMEM footprint: double-buffered x/w/out tiles + f32 bias (+acc)."""
    b = 2 * (tm * tk + tk * tn + tm * tn) * itemsize + 2 * tn * 4
    if multi_k:
        b += tm * tn * 4
    return b


# --------------------------------------------------------------------------
# Kernels
# --------------------------------------------------------------------------
def _equal_linear_kernel_single_k(x_ref, w_ref, b_ref, o_ref):
    """K collapsed into the tile: one MXU dot + bias + store per (i, j) tile.

    x_ref: (tm, tk)   activation tile (tk == full padded in_dim)
    w_ref: (tk, tn)   weight tile, pre-transposed (in_dim, out_dim) layout
    b_ref: (1, tn)    f32 bias tile
    o_ref: (tm, tn)   output tile
    """
    acc = jnp.dot(x_ref[...], w_ref[...], preferred_element_type=jnp.float32)
    o_ref[...] = (acc + b_ref[...]).astype(o_ref.dtype)


def _equal_linear_kernel_multi_k(x_ref, w_ref, b_ref, o_ref, acc_ref):
    """Large-K fallback: f32 VMEM accumulator, K reduction over grid axis 2."""
    k = pl.program_id(2)

    @pl.when(k == 0)
    def _():
        acc_ref[...] = jnp.zeros_like(acc_ref)

    acc_ref[...] += jnp.dot(x_ref[...], w_ref[...],
                            preferred_element_type=jnp.float32)

    @pl.when(k == pl.num_programs(2) - 1)
    def _():
        o_ref[...] = (acc_ref[...] + b_ref[...]).astype(o_ref.dtype)


# --------------------------------------------------------------------------
# One-time parameter preprocessing (outside the hot path)
# --------------------------------------------------------------------------
def prepare_equal_linear_params(weight, bias, *, compute_dtype=None,
                                block_m=512, block_n=512, block_k=1024,
                                max_single_k=None, vmem_budget_bytes=40 << 20):
    """Transpose/pad/cast the weight once.  Returns (w_p, b_p, tk).

    weight: (out_dim, in_dim)  PyTorch nn.Linear layout
    bias:   (out_dim,)
    compute_dtype: e.g. jnp.bfloat16 for v6e/v7x (accumulation stays f32)
    """
    out_dim, in_dim = weight.shape
    assert bias.shape == (out_dim,)
    dtype = compute_dtype if compute_dtype is not None else weight.dtype
    itemsize = jnp.dtype(dtype).itemsize

    k_aligned = _round_up(in_dim, 128)
    n_aligned = _round_up(out_dim, 128)

    # Largest single-shot K whose double-buffered tiles still fit the
    # (v7x-safe) VMEM budget at nominal (block_m, block_n) tile sizes.
    tm_nom = block_m
    tn_nom = min(block_n, n_aligned)
    max_tk = (vmem_budget_bytes // (2 * itemsize) - tm_nom * tn_nom) // (tm_nom + tn_nom)
    max_tk = max(128, (max_tk // 128) * 128)
    if max_single_k is not None:
        max_tk = min(max_tk, max_single_k)

    if k_aligned <= max_tk:
        tk = k_aligned                      # K-collapse: no accumulator needed
    else:
        tk = min(block_k, max_tk)           # large-K fallback: grid over K
    k_p = _round_up(in_dim, tk)

    # One-time layout change: (out_dim, in_dim) -> (in_dim, out_dim) so the
    # kernel contraction is a plain (tm,tk)x(tk,tn) dot (no per-step transpose).
    w = jnp.transpose(weight)
    if compute_dtype is not None:
        w = w.astype(compute_dtype)         # one-time cast, not per call
    w_p = jnp.pad(w, ((0, k_p - in_dim), (0, n_aligned - out_dim)))
    b_p = jnp.pad(bias.astype(jnp.float32).reshape(1, out_dim),
                  ((0, 0), (0, n_aligned - out_dim)))
    return w_p, b_p, int(tk)


# --------------------------------------------------------------------------
# Forward pass
# --------------------------------------------------------------------------
@functools.partial(
    jax.jit,
    static_argnames=("out_dim", "tk", "block_m", "block_n", "vmem_budget_bytes"))
def equal_linear(x, w_p, b_p, *, out_dim, tk, block_m=512, block_n=512,
                 vmem_budget_bytes=40 << 20):
    """EqualLinear forward: x @ weight.T + bias, with preprocessed params.

    x:   (N, in_dim)
    w_p: (k_p, n_p)   padded, transposed weight from prepare_equal_linear_params
    b_p: (1, n_p)     padded f32 bias
    """
    m, in_dim = x.shape
    k_p, n_p = w_p.shape
    assert in_dim <= k_p and k_p % tk == 0
    num_k = k_p // tk
    multi_k = num_k > 1
    out_dtype = x.dtype

    if w_p.dtype != x.dtype:
        x = x.astype(w_p.dtype)             # match weight compute dtype (e.g. bf16)
    itemsize = jnp.dtype(x.dtype).itemsize

    # ---- tile sizes (dtype-aware sublane rounding; shrink to fit VMEM) ----
    m_mult = _sublane_multiple(x.dtype)
    tm = min(block_m, _round_up(m, m_mult))
    tn = _choose_tn(n_p, block_n)
    while tn > 128 and _footprint_bytes(tm, tn, tk, itemsize, multi_k) > vmem_budget_bytes:
        tn = _choose_tn(n_p, tn - 128)
    while tm > m_mult and _footprint_bytes(tm, tn, tk, itemsize, multi_k) > vmem_budget_bytes:
        tm = max(m_mult, _round_up(tm // 2, m_mult))
    m_p = _round_up(m, tm)

    # ---- megacore: guarantee >=2 blocks on a parallel axis when possible ----
    if (m_p // tm) == 1 and (n_p // tn) == 1 and n_p >= 256:
        tn = 128 * _largest_proper_divisor(n_p // 128)

    # ---- activation padding only (weight/bias were padded once at prep) ----
    x_p = jnp.pad(x, ((0, m_p - m), (0, k_p - in_dim)))

    footprint = _footprint_bytes(tm, tn, tk, itemsize, multi_k)
    vmem_limit = int(min(max(footprint + (8 << 20), 16 << 20), 44 << 20))

    cost = pl.CostEstimate(
        flops=2 * m_p * k_p * n_p,
        transcendentals=0,
        bytes_accessed=(m_p * k_p + k_p * n_p + n_p) * itemsize
        + m_p * n_p * jnp.dtype(out_dtype).itemsize,
    )
    out_shape = jax.ShapeDtypeStruct((m_p, n_p), out_dtype)

    if not multi_k:
        out_p = pl.pallas_call(
            _equal_linear_kernel_single_k,
            out_shape=out_shape,
            grid=(m_p // tm, n_p // tn),
            in_specs=[
                pl.BlockSpec((tm, tk), lambda i, j: (i, 0)),   # x tile
                pl.BlockSpec((tk, tn), lambda i, j: (0, j)),   # weight tile
                pl.BlockSpec((1, tn), lambda i, j: (0, j)),    # bias tile
            ],
            out_specs=pl.BlockSpec((tm, tn), lambda i, j: (i, j)),
            compiler_params=pltpu.CompilerParams(
                dimension_semantics=("parallel", "parallel"),
                vmem_limit_bytes=vmem_limit,
            ),
            cost_estimate=cost,
        )(x_p, w_p, b_p)
    else:
        out_p = pl.pallas_call(
            _equal_linear_kernel_multi_k,
            out_shape=out_shape,
            grid=(m_p // tm, n_p // tn, num_k),
            in_specs=[
                pl.BlockSpec((tm, tk), lambda i, j, k: (i, k)),
                pl.BlockSpec((tk, tn), lambda i, j, k: (k, j)),
                pl.BlockSpec((1, tn), lambda i, j, k: (0, j)),
            ],
            out_specs=pl.BlockSpec((tm, tn), lambda i, j, k: (i, j)),
            scratch_shapes=[pltpu.VMEM((tm, tn), jnp.float32)],
            compiler_params=pltpu.CompilerParams(
                dimension_semantics=("parallel", "parallel", "arbitrary"),
                vmem_limit_bytes=vmem_limit,
            ),
            cost_estimate=cost,
        )(x_p, w_p, b_p)

    return out_p[:m, :out_dim]


# --------------------------------------------------------------------------
# Module-style wrapper mirroring the PyTorch EqualLinear
# --------------------------------------------------------------------------
class EqualLinear:
    """nn.Linear with zeroed bias; weight preprocessing done once at init."""

    def __init__(self, key, in_dim, out_dim, *, compute_dtype=None, **prep_kwargs):
        bound = 1.0 / sqrt(in_dim)          # nn.Linear default init
        self.weight = jax.random.uniform(
            key, (out_dim, in_dim), dtype=jnp.float32, minval=-bound, maxval=bound)
        self.bias = jnp.zeros((out_dim,), dtype=jnp.float32)   # bias.data.zero_()
        self.out_dim = out_dim
        self.w_p, self.b_p, self.tk = prepare_equal_linear_params(
            self.weight, self.bias, compute_dtype=compute_dtype, **prep_kwargs)

    def __call__(self, x, **kwargs):
        return equal_linear(x, self.w_p, self.b_p,
                            out_dim=self.out_dim, tk=self.tk, **kwargs)


if __name__ == "__main__":
    key = jax.random.PRNGKey(0)
    k1, k2, k3, k4, k5 = jax.random.split(key, 5)

    # --- Small shapes (batch=8, in_dim=32, out_dim=64): single-tile, K-collapsed ---
    batch, in_dim, out_dim = 8, 32, 64
    layer = EqualLinear(k1, in_dim, out_dim)
    x = jax.random.normal(k2, (batch, in_dim), dtype=jnp.float32)
    out = layer(x)
    jax.block_until_ready(out)
    ref = x @ layer.weight.T + layer.bias
    assert out.shape == (batch, out_dim)
    assert jnp.allclose(out, ref, atol=1e-5, rtol=1e-5)

    # --- Non-aligned shapes: padding/slicing + megacore N split, K-collapsed ---
    batch2, in_dim2, out_dim2 = 300, 384, 320
    layer2 = EqualLinear(k3, in_dim2, out_dim2)
    x2 = jax.random.normal(k4, (batch2, in_dim2), dtype=jnp.float32)
    out2 = layer2(x2)
    jax.block_until_ready(out2)
    ref2 = x2 @ layer2.weight.T + layer2.bias
    assert out2.shape == (batch2, out_dim2)
    assert jnp.allclose(out2, ref2, atol=1e-4, rtol=1e-4)

    # --- Force the multi-K accumulator path (large-in_dim fallback), nonzero bias
    #     to exercise the bias-add (the module itself always uses a zero bias). ---
    bias3 = jax.random.normal(k5, (out_dim2,), dtype=jnp.float32)
    w3_p, b3_p, tk3 = prepare_equal_linear_params(
        layer2.weight, bias3, block_k=128, max_single_k=128)
    out3 = equal_linear(x2, w3_p, b3_p, out_dim=out_dim2, tk=tk3)
    jax.block_until_ready(out3)
    ref3 = x2 @ layer2.weight.T + bias3
    assert jnp.allclose(out3, ref3, atol=1e-4, rtol=1e-4)

    print("KERNEL_OK")
</pallas_src>

<mosaic_0001>
module attributes {stable_mosaic.version = 11 : i64} {
  func.func @_equal_linear_kernel_single_k(%arg0: i32, %arg1: i32, %arg2: memref<8x128xf32, #tpu.memory_space<vmem>>, %arg3: memref<128x128xf32, #tpu.memory_space<vmem>>, %arg4: memref<1x128xf32, #tpu.memory_space<vmem>>, %arg5: memref<8x128xf32, #tpu.memory_space<vmem>>) attributes {dimension_semantics = [#tpu.dimension_semantics<parallel>, #tpu.dimension_semantics<parallel>], iteration_bounds = array<i64: 1, 1>, scalar_prefetch = 0 : i64, scratch_operands = 0 : i64, tpu.core_type = #tpu.core_type<tc>, window_params = [{transform_indices = @transform_0, window_bounds = array<i64: 8, 128>}, {transform_indices = @transform_1, window_bounds = array<i64: 128, 128>}, {transform_indices = @transform_2, window_bounds = array<i64: 1, 128>}, {transform_indices = @transform_3, window_bounds = array<i64: 8, 128>}]} {
    %c0 = arith.constant 0 : index
    %c0_0 = arith.constant 0 : index
    %0 = vector.load %arg2[%c0, %c0_0] : memref<8x128xf32, #tpu.memory_space<vmem>>, vector<8x128xf32>
    %c0_1 = arith.constant 0 : index
    %c0_2 = arith.constant 0 : index
    %1 = vector.load %arg3[%c0_1, %c0_2] : memref<128x128xf32, #tpu.memory_space<vmem>>, vector<128x128xf32>
    %cst = arith.constant dense<0.000000e+00> : vector<8x128xf32>
    %2 = tpu.matmul %0, %1, %cst {dimension_numbers = #tpu.dot_dimension_numbers<[1], [0], [0], [1], [0, 0, 1, 1], [], []>} : vector<8x128xf32>, vector<128x128xf32>, vector<8x128xf32> -> vector<8x128xf32>
    %c0_3 = arith.constant 0 : index
    %c0_4 = arith.constant 0 : index
    %3 = vector.load %arg4[%c0_3, %c0_4] : memref<1x128xf32, #tpu.memory_space<vmem>>, vector<1x128xf32>
    %4 = vector.broadcast %3 : vector<1x128xf32> to vector<8x128xf32>
    %5 = arith.addf %2, %4 : vector<8x128xf32>
    %c0_5 = arith.constant 0 : index
    %c0_6 = arith.constant 0 : index
    %6 = vector.load %arg5[%c0_5, %c0_6] : memref<8x128xf32, #tpu.memory_space<vmem>>, vector<8x128xf32>
    tpu.vector_store %arg5[%c0_5, %c0_6], %5 {strides = array<i32>} : memref<8x128xf32, #tpu.memory_space<vmem>>, vector<8x128xf32>,
    return
  }
  func.func @transform_0(%arg0: i32, %arg1: i32) -> (i32, i32) {
    %c0_i32 = arith.constant 0 : i32
    %c0_i32_0 = arith.constant 0 : i32
    return %arg0, %c0_i32 : i32, i32
  }
  func.func @transform_1(%arg0: i32, %arg1: i32) -> (i32, i32) {
    %c0_i32 = arith.constant 0 : i32
    %c0_i32_0 = arith.constant 0 : i32
    return %c0_i32, %arg1 : i32, i32
  }
  func.func @transform_2(%arg0: i32, %arg1: i32) -> (i32, i32) {
    %c0_i32 = arith.constant 0 : i32
    %c0_i32_0 = arith.constant 0 : i32
    return %c0_i32, %arg1 : i32, i32
  }
  func.func @transform_3(%arg0: i32, %arg1: i32) -> (i32, i32) {
    %c0_i32 = arith.constant 0 : i32
    return %arg0, %arg1 : i32, i32
  }
}

</mosaic_0001>

<bundles_post_ra>
// kernel: equal_linear.1
= control target key start
LH: loop header
LB: loop body
LE: loop exit
PB: predicated region body
PF: predicated region fallthrough
CT: control target
= control target key end

     0   :  { %8 = vsyncpa [#allocation3], 0  ;;  %s280_s0 = inlined_call_operand.vmem [shape: f32[8,128], index: 0, kind: input, shape index: {}]   ;;  %s281_s1 = inlined_call_operand.hbm [shape: f32[128,128], index: 1, kind: input, shape index: {}]   ;;  %s282_s2 = inlined_call_operand.vmem [shape: f32[1,128], index: 2, kind: input, shape index: {}]   ;;  %s283_s3 = inlined_call_operand.hbm [shape: f32[8,128], index: 3, kind: output, shape index: {}]  }
   0x1   :  { %9 = vsyncpa [#allocation4], 0  ;;  %s242_s12 = smov [#allocation2]  }
   0x2   :  { %s17_s13 = sshll.u32 %s242_s12, 4  ;;  %s18_s13 = int_to_ptr.vmem [resolvable:$true] %s17_s13 }
   0x3   :  { %s206_s14 = scalar_lea.vmem %s18_s13, 2048  ;;  %p211_p1 = scmp.lt.s32.totalorder %s18_s13, %s18_s13 }
   0x4   :  { %p207_p0 = scmp.ne.s32.totalorder %s18_s13, %s206_s14  ;;  %p212_p2 = scmp.lt.s32.totalorder %s206_s14, %s206_s14 }
   0x6   :  { %p213_p3 = por %p212_p2, %p211_p1 }
   0x8   :  { %p214_p4 = pnand %p213_p3, %p207_p0 }
   0xa   :  { %217 = shalt.err (!%p214_p4)
}
   0xb   :  { %s243_s15 = smov 128   ;;  %s244_s16 = smov 8  }
   0xc   :  { %23 = dma.hbm_to_vmem [thread:$0]  %s281_s1, 2048, %s18_s13, [#allocation3], %s243_s15, %s243_s15, %s244_s16  }
   0xd   :  { %238 = dma.done.wait [#allocation3], 2048  }
   0xe   :  { %239 = vsyncadd [#allocation3], 4294965248  ;;  %v245_v0 = vmov 0.0   ;;  %vm246_vm0 = vmmov 0   ;;  %v45_v1 = vld [vmem:[#allocation2 + $0x78] sm:$0xff]  ;;  %v44_v2 = vld [vmem:[#allocation2 + $0x70] sm:$0xff] }
   0xf   :  { %157 = vmatprep.subr.mxu0 %v245_v0  ;;  %189 = vmatprep.mubr.msk.f32.mxu0 %vm246_vm0, %v245_v0  ;;  %v43_v3 = vld [vmem:[#allocation2 + $0x68] sm:$0xff]  ;;  %v42_v4 = vld [vmem:[#allocation2 + $0x60] sm:$0xff]  ;;  %v41_v5 = vld [vmem:[#allocation2 + $0x58] sm:$0xff]  ;;  %s247_s22 = smov [#allocation5]  }
  0x10   :  { %158 = vmatpush3.msra.mxu0 %v45_v1  ;;  %v40_v6 = vld [vmem:[#allocation2 + $0x50] sm:$0xff]  ;;  %v39_v7 = vld [vmem:[#allocation2 + $0x48] sm:$0xff]  ;;  %v38_v8 = vld [vmem:[#allocation2 + $0x40] sm:$0xff]  ;;  %s130_s23 = sshll.u32 %s247_s22, 4  ;;  %s131_s23 = int_to_ptr.vmem [resolvable:$true] %s130_s23 }
  0x11   :  { %159 = vmatprep.subr.mxu0 %v245_v0  ;;  %v37_v9 = vld [vmem:[#allocation2 + $0x38] sm:$0xff]  ;;  %v36_v10 = vld [vmem:[#allocation2 + $0x30] sm:$0xff]  ;;  %v35_v11 = vld [vmem:[#allocation2 + $0x28] sm:$0xff]  ;;  %s218_s24 = scalar_lea.vmem %s131_s23, 128  ;;  %p223_p6 = scmp.lt.s32.totalorder %s131_s23, %s131_s23 }
  0x12   :  { %160 = vmatpush3.msra.mxu0 %v44_v2  ;;  %v34_v12 = vld [vmem:[#allocation2 + $0x20] sm:$0xff]  ;;  %v33_v13 = vld [vmem:[#allocation2 + $0x18] sm:$0xff]  ;;  %v32_v14 = vld [vmem:[#allocation2 + $0x10] sm:$0xff]  ;;  %p219_p5 = scmp.ne.s32.totalorder %s131_s23, %s218_s24  ;;  %p224_p7 = scmp.lt.s32.totalorder %s218_s24, %s218_s24 }
  0x13   :  { %161 = vmatprep.subr.mxu0 %v245_v0  ;;  %v31_v15 = vld [vmem:[#allocation2 + $0x8] sm:$0xff]  ;;  %v30_v16 = vld [vmem:[#allocation2] sm:$0xff] }
  0x14   :  { %162 = vmatpush3.msra.mxu0 %v43_v3  ;;  %v29_v17 = vld [vmem:[%s280_s0] sm:$0xff]  ;;  %p225_p8 = por %p224_p7, %p223_p6 }
  0x15   :  { %163 = vmatprep.subr.mxu0 %v245_v0  ;;  %v139_v18 = vld [vmem:[%s282_s2] ss:$0 sm:$0xff] }
  0x16   :  { %164 = vmatpush3.msra.mxu0 %v42_v4  ;;  %p226_p9 = pnand %p225_p8, %p219_p5 }
  0x17   :  { %165 = vmatprep.subr.mxu0 %v245_v0 }
  0x18   :  { %166 = vmatpush3.msra.mxu0 %v41_v5 }
  0x19   :  { %167 = vmatprep.subr.mxu0 %v245_v0 }
  0x1a   :  { %168 = vmatpush3.msra.mxu0 %v40_v6 }
  0x1b   :  { %169 = vmatprep.subr.mxu0 %v245_v0 }
  0x1c   :  { %170 = vmatpush3.msra.mxu0 %v39_v7 }
  0x1d   :  { %171 = vmatprep.subr.mxu0 %v245_v0 }
  0x1e   :  { %172 = vmatpush3.msra.mxu0 %v38_v8 }
  0x1f   :  { %173 = vmatprep.subr.mxu0 %v245_v0 }
  0x20   :  { %174 = vmatpush3.msra.mxu0 %v37_v9 }
  0x21   :  { %175 = vmatprep.subr.mxu0 %v245_v0 }
  0x22   :  { %176 = vmatpush3.msra.mxu0 %v36_v10 }
  0x23   :  { %177 = vmatprep.subr.mxu0 %v245_v0 }
  0x24   :  { %178 = vmatpush3.msra.mxu0 %v35_v11 }
  0x25   :  { %179 = vmatprep.subr.mxu0 %v245_v0 }
  0x26   :  { %180 = vmatpush3.msra.mxu0 %v34_v12 }
  0x27   :  { %181 = vmatprep.subr.mxu0 %v245_v0 }
  0x28   :  { %182 = vmatpush3.msra.mxu0 %v33_v13 }
  0x29   :  { %183 = vmatprep.subr.mxu0 %v245_v0 }
  0x2a   :  { %184 = vmatpush3.msra.mxu0 %v32_v14 }
  0x2b   :  { %185 = vmatprep.subr.mxu0 %v245_v0 }
  0x2c   :  { %186 = vmatpush3.msra.mxu0 %v31_v15 }
  0x2d   :  { %187 = vmatprep.subr.mxu0 %v245_v0 }
  0x2e   :  { %188 = vmatpush3.msra.mxu0 %v30_v16 }
  0x2f   :  { %190 = vmatmul.mubr.f32.vlgmr.msra.gmra.mxu0 %v29_v17 }
  0xef   :  { %v119_v19 = vpop.f32.mrf.mxu0 }
  0xf0   :  { %v120_v20 = vadd.f32 %v139_v18, %v119_v19 }
  0xf1   :  { %v191_v21 = vpop.f32.mrf.mxu0 }
  0xf2   :  { %123 = vst [vmem:[#allocation5] sm:$0xff] %v120_v20 }
  0xf3   :  { %229 = shalt.err (!%p226_p9)
}
  0xf4   :  { %133 = dma.vmem_to_hbm [thread:$0]  %s131_s23, 128, %s283_s3, [#allocation4]  }
  0xf5   :  { %240 = dma.done.wait [#allocation4], 128  }
  0xf6   :  { %241 = vsyncadd [#allocation4], 4294967168 }
  0xf7   :  { %137 = vsyncpa [#allocation3], 1 }
  0xf8   :  { %138 = vsyncpa [#allocation4], 1 }

</bundles_post_ra>
